<compile_context>
chip_gen: v6e
topology: v6e:2x2x1
jax: 0.10.0
libtpu: 0.0.40
codegen_flags: <defaults>
</compile_context>

<pallas_src>
import math
from typing import NamedTuple

import jax
import jax.numpy as jnp
import numpy as np
from jax.experimental import pallas as pl
from jax.experimental.pallas import tpu as pltpu


def _round_up(n, m):
    return (n + m - 1) // m * m


# ----------------------------------------------------------------------------
# Kernels
# ----------------------------------------------------------------------------
def _fl_kernel_single_k(x_ref, w_ref, b_ref, o_ref):
    """Whole reduction in one step: dot + bias straight to the output tile.

    x_ref: (tm, Inp)   activations (compute dtype)
    w_ref: (Inp, tn)   pre-masked, pre-transposed weight tile (compute dtype)
    b_ref: (1, tn)     f32 bias row
    o_ref: (tm, tn)    output tile
    """
    o_ref[...] = (
        jnp.dot(x_ref[...], w_ref[...], preferred_element_type=jnp.float32)
        + b_ref[...]
    ).astype(o_ref.dtype)


def _fl_kernel_multi_k(x_ref, w_ref, b_ref, o_ref, acc_ref):
    """K-tiled variant (only used when In > 1024) with an f32 VMEM accumulator."""
    k = pl.program_id(2)

    @pl.when(k == 0)
    def _init():
        acc_ref[...] = jnp.zeros_like(acc_ref)

    acc_ref[...] += jnp.dot(
        x_ref[...], w_ref[...], preferred_element_type=jnp.float32
    )

    @pl.when(k == pl.num_programs(2) - 1)
    def _finalize():
        o_ref[...] = (acc_ref[...] + b_ref[...]).astype(o_ref.dtype)


# ----------------------------------------------------------------------------
# Parameter preparation (hoisted out of the per-call path)
# ----------------------------------------------------------------------------
class FilterLinearParams(NamedTuple):
    w_p: jax.Array        # (Inp, Outp) masked, transposed, padded, compute dtype
    w_t: jax.Array        # (In, Out)   masked, transposed (fast path)
    b_p: jax.Array        # (1, Outp)   f32 padded bias row
    bias_vec: jax.Array   # (Out,)      f32 bias (fast path)
    In: int
    Out: int
    Inp: int
    Outp: int
    tk: int
    tn: int


def prepare_filter_linear(weight, filter_square_matrix, bias=None, *,
                          compute_dtype=None):
    """Fold the static 0/1 filter into the weight, transpose to (In, Out), pad
    lane-dense to the kernel's tile grid and cast to the compute dtype.

    Call ONCE per parameter set (weight/filter/bias are constant across GRU-D
    steps) and reuse with filter_linear_apply()."""
    Out, In = weight.shape
    assert filter_square_matrix.shape == (Out, In), "filter / weight shape mismatch"

    if compute_dtype is None:
        # bf16 weights halve HBM traffic and ~double MXU rate on v6e/v7x
        # (v5e's MXU is bf16-native too); accumulation stays f32.
        compute_dtype = jnp.bfloat16 if weight.dtype == jnp.float32 else weight.dtype
    cdt = np.dtype(compute_dtype)

    # Mask folded once; transposed to (In, Out) so the kernel never transposes
    # on-chip and never sees the mask.
    w_t = (filter_square_matrix.astype(weight.dtype) * weight).T      # (In, Out)

    in_p128 = _round_up(In, 128)
    out_p128 = _round_up(Out, 128)
    # Tile first, then round padded extents up to the tile:
    #  - single K step (no accumulator RMW, no K grid axis) whenever the
    #    reduction fits in <= 1024 (typical GRU-D feature sizes),
    #  - otherwise 512-deep K tiles,
    #  - N tiles up to 512 wide (keeps the 256x256 MXU fully fed on v6e/v7x).
    tk = in_p128 if in_p128 <= 1024 else 512
    tn = min(512, out_p128)
    Inp = _round_up(In, tk)
    Outp = _round_up(Out, tn)

    # Zero padding on K is mathematically inert; padded Out columns are sliced
    # off by the caller.
    w_p = jnp.pad(w_t, ((0, Inp - In), (0, Outp - Out))).astype(cdt)

    if bias is None:
        bias = jnp.zeros((Out,), jnp.float32)
    bias_vec = bias.astype(jnp.float32).reshape(Out)
    b_p = jnp.pad(bias_vec.reshape(1, Out), ((0, 0), (0, Outp - Out)))  # stays f32

    return FilterLinearParams(
        w_p=w_p, w_t=w_t.astype(cdt), b_p=b_p, bias_vec=bias_vec,
        In=In, Out=Out, Inp=Inp, Outp=Outp, tk=tk, tn=tn)


# ----------------------------------------------------------------------------
# Forward application
# ----------------------------------------------------------------------------
def filter_linear_apply(x, params):
    """y = x @ (filter * weight).T + bias, using pre-prepared parameters."""
    p = params
    orig_dtype = x.dtype
    *lead, In = x.shape
    assert In == p.In, "input feature size does not match prepared weight"

    x2d = x.reshape(-1, In)
    B = x2d.shape[0]
    cdt = p.w_p.dtype

    # Tiny-problem fast path: pad + pallas_call fixed cost dominates a
    # sub-microsecond 128x128x128 matmul; let XLA handle it directly.
    if B <= 8 and p.Inp <= 128 and p.Outp <= 128:
        y = jnp.dot(x2d.astype(cdt), p.w_t, preferred_element_type=jnp.float32)
        y = (y + p.bias_vec).astype(orig_dtype)
        return y.reshape(*lead, p.Out)

    itemsize = cdt.itemsize
    out_itemsize = np.dtype(orig_dtype).itemsize
    # Sub-32-bit dtypes pack rows along sublanes: keep tm a clean multiple.
    row_mult = 8 if itemsize >= 4 else (16 if itemsize == 2 else 32)
    multi_k = p.Inp > p.tk

    tm = min(_round_up(B, row_mult), 512)

    def _step_bytes(tm_):
        x_b = 2 * tm_ * p.tk * itemsize            # double-buffered x tile
        w_b = 2 * p.tk * p.tn * itemsize           # double-buffered weight tile
        o_b = 2 * tm_ * p.tn * out_itemsize        # double-buffered output tile
        acc_b = tm_ * p.tn * 4 if multi_k else 0   # resident f32 accumulator
        b_b = 2 * p.tn * 4                         # bias row
        return x_b + w_b + o_b + acc_b + b_b

    # Keep the per-step footprint well inside the default scoped VMEM on every
    # generation (v5e: 16 MiB, v6e/v7x: 32 MiB) -> no vmem_limit override.
    _VMEM_BUDGET = 12 * 1024 * 1024
    while tm > row_mult and _step_bytes(tm) > _VMEM_BUDGET:
        tm = max(row_mult, _round_up(tm // 2, row_mult))

    Bp = _round_up(B, tm)

    # v7x has two TensorCores: if both parallel grid axes collapsed to a single
    # block, split M in two (tiny weight-retraffic cost on single-TC chips,
    # up to 2x compute throughput on v7x).
    if Bp // tm == 1 and p.Outp // p.tn == 1 and tm >= 2 * row_mult and B > row_mult:
        tm = _round_up((tm + 1) // 2, row_mult)
        Bp = _round_up(B, tm)

    x_p = jnp.pad(x2d, ((0, Bp - B), (0, p.Inp - In))).astype(cdt)

    m_blocks = Bp // tm
    n_blocks = p.Outp // p.tn
    out_shape = jax.ShapeDtypeStruct((Bp, p.Outp), orig_dtype)

    if not multi_k:
        # Whole reduction per step: no accumulator scratch, no K grid axis.
        y_p = pl.pallas_call(
            _fl_kernel_single_k,
            out_shape=out_shape,
            grid=(m_blocks, n_blocks),
            in_specs=[
                pl.BlockSpec((tm, p.tk), lambda i, j: (i, 0)),     # x
                pl.BlockSpec((p.tk, p.tn), lambda i, j: (0, j)),   # masked W^T
                pl.BlockSpec((1, p.tn), lambda i, j: (0, j)),      # bias row
            ],
            out_specs=pl.BlockSpec((tm, p.tn), lambda i, j: (i, j)),
            compiler_params=pltpu.CompilerParams(
                dimension_semantics=("parallel", "parallel")),
        )(x_p, p.w_p, p.b_p)
    else:
        k_blocks = p.Inp // p.tk
        y_p = pl.pallas_call(
            _fl_kernel_multi_k,
            out_shape=out_shape,
            grid=(m_blocks, n_blocks, k_blocks),
            in_specs=[
                pl.BlockSpec((tm, p.tk), lambda i, j, k: (i, k)),    # x
                pl.BlockSpec((p.tk, p.tn), lambda i, j, k: (k, j)),  # masked W^T
                pl.BlockSpec((1, p.tn), lambda i, j, k: (0, j)),     # bias row
            ],
            out_specs=pl.BlockSpec((tm, p.tn), lambda i, j, k: (i, j)),
            scratch_shapes=[pltpu.VMEM((tm, p.tn), jnp.float32)],
            compiler_params=pltpu.CompilerParams(
                dimension_semantics=("parallel", "parallel", "arbitrary")),
        )(x_p, p.w_p, p.b_p)

    y = y_p[:B, :p.Out]
    return y.reshape(*lead, p.Out)


def filter_linear(x, weight, filter_square_matrix, bias=None, *,
                  compute_dtype=None):
    """One-shot convenience wrapper (prepares parameters on every call).

    For repeated application (GRU-D steps), call prepare_filter_linear() once
    and reuse filter_linear_apply()."""
    params = prepare_filter_linear(weight, filter_square_matrix, bias,
                                   compute_dtype=compute_dtype)
    return filter_linear_apply(x, params)


# ----------------------------------------------------------------------------
# Self-test
# ----------------------------------------------------------------------------
if __name__ == "__main__":
    key = jax.random.PRNGKey(0)
    k_x, k_w, k_b, k_x2, k_w2, k_b2, k_f2 = jax.random.split(key, 7)

    # --- GRU-D-like case: identity filter, 33 features, 48 stacked timesteps.
    in_features = out_features = 33
    batch, seq = 4, 48                               # 192 rows after flattening
    stdv = 1.0 / math.sqrt(in_features)              # PyTorch reset_parameters()
    weight = jax.random.uniform(
        k_w, (out_features, in_features), jnp.float32, -stdv, stdv)
    bias = jax.random.uniform(k_b, (out_features,), jnp.float32, -stdv, stdv)
    filt = jnp.eye(out_features, in_features, dtype=jnp.float32)   # GRU-D identity mask
    x = jax.random.normal(k_x, (batch, seq, in_features), jnp.float32)

    y_ref = x @ (filt * weight).T + bias

    # Parameters prepared once (mask fold / transpose / pad / bf16 cast hoisted
    # out of the per-step path), then reused across calls.
    params = prepare_filter_linear(weight, filt, bias)    # bf16 compute by default
    y = jax.block_until_ready(filter_linear_apply(x, params))
    assert y.shape == (batch, seq, out_features)
    assert jnp.allclose(y, y_ref, atol=3e-2, rtol=3e-2), "bf16 path mismatch"

    # Explicit f32 compute path — tight tolerance.
    y32 = jax.block_until_ready(
        filter_linear(x, weight, filt, bias, compute_dtype=jnp.float32))
    assert jnp.allclose(y32, y_ref, atol=1e-5, rtol=1e-5), "f32 path mismatch"

    # Tiny-problem fast path (single timestep, few rows).
    x_small = x[0, :2]
    y_small = jax.block_until_ready(filter_linear_apply(x_small, params))
    assert jnp.allclose(y_small, y_ref[0, :2], atol=3e-2, rtol=3e-2), \
        "fast path mismatch"

    # --- Larger case exercising the multi-K accumulator kernel (In > 1024). --
    In2, Out2, B2 = 1500, 96, 64
    stdv2 = 1.0 / math.sqrt(In2)
    w2 = jax.random.uniform(k_w2, (Out2, In2), jnp.float32, -stdv2, stdv2)
    b2 = jax.random.uniform(k_b2, (Out2,), jnp.float32, -stdv2, stdv2)
    f2 = (jax.random.uniform(k_f2, (Out2, In2)) < 0.5).astype(jnp.float32)
    x2 = jax.random.normal(k_x2, (B2, In2), jnp.float32)

    y2 = jax.block_until_ready(filter_linear(x2, w2, f2, b2))   # bf16, K tiled 3x512
    y2_ref = x2 @ (f2 * w2).T + b2
    assert y2.shape == (B2, Out2)
    assert jnp.allclose(y2, y2_ref, atol=3e-2, rtol=3e-2), "multi-K path mismatch"

    print("KERNEL_OK")
</pallas_src>

<mosaic_0001>
module attributes {stable_mosaic.version = 11 : i64} {
  func.func @_fl_kernel_single_k(%arg0: i32, %arg1: i32, %arg2: memref<96x128xbf16, #tpu.memory_space<vmem>>, %arg3: memref<128x128xbf16, #tpu.memory_space<vmem>>, %arg4: memref<1x128xf32, #tpu.memory_space<vmem>>, %arg5: memref<96x128xf32, #tpu.memory_space<vmem>>) attributes {dimension_semantics = [#tpu.dimension_semantics<parallel>, #tpu.dimension_semantics<parallel>], iteration_bounds = array<i64: 2, 1>, scalar_prefetch = 0 : i64, scratch_operands = 0 : i64, tpu.core_type = #tpu.core_type<tc>, window_params = [{transform_indices = @transform_0, window_bounds = array<i64: 96, 128>}, {transform_indices = @transform_1, window_bounds = array<i64: 128, 128>}, {transform_indices = @transform_2, window_bounds = array<i64: 1, 128>}, {transform_indices = @transform_3, window_bounds = array<i64: 96, 128>}]} {
    %c0 = arith.constant 0 : index
    %c0_0 = arith.constant 0 : index
    %0 = vector.load %arg2[%c0, %c0_0] : memref<96x128xbf16, #tpu.memory_space<vmem>>, vector<96x128xbf16>
    %c0_1 = arith.constant 0 : index
    %c0_2 = arith.constant 0 : index
    %1 = vector.load %arg3[%c0_1, %c0_2] : memref<128x128xbf16, #tpu.memory_space<vmem>>, vector<128x128xbf16>
    %cst = arith.constant dense<0.000000e+00> : vector<96x128xf32>
    %2 = tpu.matmul %0, %1, %cst {dimension_numbers = #tpu.dot_dimension_numbers<[1], [0], [0], [1], [0, 0, 1, 1], [], []>} : vector<96x128xbf16>, vector<128x128xbf16>, vector<96x128xf32> -> vector<96x128xf32>
    %c0_3 = arith.constant 0 : index
    %c0_4 = arith.constant 0 : index
    %3 = vector.load %arg4[%c0_3, %c0_4] : memref<1x128xf32, #tpu.memory_space<vmem>>, vector<1x128xf32>
    %4 = vector.broadcast %3 : vector<1x128xf32> to vector<96x128xf32>
    %5 = arith.addf %2, %4 : vector<96x128xf32>
    %c0_5 = arith.constant 0 : index
    %c0_6 = arith.constant 0 : index
    %6 = vector.load %arg5[%c0_5, %c0_6] : memref<96x128xf32, #tpu.memory_space<vmem>>, vector<96x128xf32>
    tpu.vector_store %arg5[%c0_5, %c0_6], %5 {strides = array<i32>} : memref<96x128xf32, #tpu.memory_space<vmem>>, vector<96x128xf32>,
    return
  }
  func.func @transform_0(%arg0: i32, %arg1: i32) -> (i32, i32) {
    %c0_i32 = arith.constant 0 : i32
    %c0_i32_0 = arith.constant 0 : i32
    return %arg0, %c0_i32 : i32, i32
  }
  func.func @transform_1(%arg0: i32, %arg1: i32) -> (i32, i32) {
    %c0_i32 = arith.constant 0 : i32
    %c0_i32_0 = arith.constant 0 : i32
    return %c0_i32, %arg1 : i32, i32
  }
  func.func @transform_2(%arg0: i32, %arg1: i32) -> (i32, i32) {
    %c0_i32 = arith.constant 0 : i32
    %c0_i32_0 = arith.constant 0 : i32
    return %c0_i32, %arg1 : i32, i32
  }
  func.func @transform_3(%arg0: i32, %arg1: i32) -> (i32, i32) {
    %c0_i32 = arith.constant 0 : i32
    return %arg0, %arg1 : i32, i32
  }
}

</mosaic_0001>

<bundles_post_ra>
// kernel: tpu_custom_call.1
= control target key start
LH: loop header
LB: loop body
LE: loop exit
PB: predicated region body
PF: predicated region fallthrough
CT: control target
= control target key end

     0   :  { %8 = vsyncpa [#allocation3], 0  ;;  %s1132_s0 = inlined_call_operand.hbm [shape: bf16[192,128], index: 0, kind: input, shape index: {}]   ;;  %s1133_s1 = inlined_call_operand.hbm [shape: bf16[128,128], index: 1, kind: input, shape index: {}]   ;;  %s1134_s2 = inlined_call_operand.vmem [shape: f32[1,128], index: 2, kind: input, shape index: {}]   ;;  %s1135_s3 = inlined_call_operand.hbm [shape: f32[192,128], index: 3, kind: output, shape index: {}]  }
   0x1   :  { %10 = vsyncpa [#allocation3 + $0x1], 0 }
   0x2   :  { %11 = vsyncpa [#allocation6], 0 }
   0x3   :  { %12 = vsyncpa [#allocation4], 0 }
   0x4   :  { %14 = vsyncpa [#allocation4 + $0x1], 0  ;;  %s924_s12 = smov 0   ;;  %s926_s13 = smov 0  }
   0x5   :  { %s928_s14 = smov 0   ;;  %s930_s15 = smov 0  }
   0x6   :  { %s932_s16 = smov 0   ;;  %s934_s17 = smov 0  }
   0x7 LB: > { %s576_s18 = sadd.s32 4294967295, %s895_s17   ;;  %s577_s19 = sadd.s32 4294967294, %s895_s17   ;;  %s895_s17 = sphi %s934_s17, %s20_s17   ;;  %s891_s16 = sphi %s932_s16, %s1151_s16   ;;  %s887_s15 = sphi %s930_s15, %s1150_s15   ;;  %s883_s14 = sphi %s928_s14, %s1149_s14   ;;  %s879_s13 = sphi %s926_s13, %s1148_s13   ;;  %s875_s12 = sphi %s924_s12, %s1147_s12  }
   0x8   : > { %p52_p0 = scmp.ne.s32.totalorder %s879_s13, %s875_s12  ;;  %p958_p1 = scmp.eq.s32.totalorder %s576_s18, 0 }
   0x9   : > { %p962_p2 = scmp.eq.s32.totalorder %s576_s18, 1  ;;  %p136_p3 = scmp.eq.s32.totalorder %s577_s19, 1 }
   0xa   : > { %p968_p4 = por %p958_p1, %p52_p0  ;;  %p578_p5 = scmp.ge.s32.totalorder %s895_s17, 1 }
   0xb   : > { %p973_p6 = por %p136_p3, %p52_p0  ;;  %p143_p7 = scmp.lt.s32.totalorder %s895_s17, 3 }
   0xc   : > { %s1139_s22 = scalar_select %p968_p4, 1, 0 }
   0xd   : > { %s1140_s23 = scalar_select %p973_p6, 1, 0 }
   0xe   : > { %p978_p8 = pnand %p578_p5, %p143_p7  ;;  %s897_s25 = smov [#allocation5]  }
   0xf   : > { %s157_s26 = sshll.u32 %s897_s25, 4  ;;  %p581_p10 = scmp.ge.s32.totalorder %s895_s17, 2  ;;  %s158_s26 = int_to_ptr.vmem [resolvable:$true] %s157_s26 }
  0x10   : > { %p674_p9 = pneg %p978_p8  ;;  %s32_s28 = sadd.s32 1, %s891_s16 }
  0x11   : > { %s768_s29 = scalar_lea.vmem %s158_s26, 1024  ;;  %p776_p5 = scmp.lt.s32.totalorder %s158_s26, %s158_s26 }
  0x12   : > { %p987_p11 = pnand %p674_p9, %p958_p1  ;;  %p769_p13 = scmp.ne.s32.totalorder %s158_s26, %s768_s29 }
  0x13   : > { %p777_p7 = scmp.lt.s32.totalorder %s768_s29, %s768_s29 }
  0x14   : > { %p759_p12 = pneg %p987_p11 }
  0x15   : > { %p778_p6 = por %p777_p7, %p776_p5 }
  0x16   : > { %p771_p0 = pnand %p769_p13, %p759_p12 }
  0x18   : > { %p772_p3 = pneg %p771_p0 }
  0x1a   : > { %p779_p4 = pnand %p778_p6, %p772_p3 }
  0x1c   : > { %782 = shalt.err (!%p779_p4)
}
  0x1d   : > { %s898_s30 = smov 64   ;;  %s899_s4 = smov 4  }
  0x1e   : > { %677 = dma.hbm_to_vmem [thread:$0]  (!%p987_p11), %s1133_s1, 1024, %s158_s26, [#allocation6], %s898_s30, %s898_s30, %s899_s4  }
  0x1f   : > { %p34_p4 = scmp.ge.s32.totalorder %s32_s28, 2  ;;  %s39_s7 = sadd.s32 1, %s883_s14 }
  0x20   : > { %p46_p6 = scmp.ne.s32.totalorder %s883_s14, %s879_s13  ;;  %p47_p9 = scmp.eq.s32.totalorder %s895_s17, 0 }
  0x21   : > { %s1153_s28 = smov (%p34_p4, %s32_s28), 0  ;;  %p687_p0 = scmp.lt.s32.totalorder %s895_s17, 2 }
  0x22   : > { %p48_p12 = por %p47_p9, %p46_p6  ;;  %p1010_p13 = por %p962_p2, %p46_p6 }
  0x23   : > { %s36_s9 = ssub.s32 %s891_s16, %s1153_s28  ;;  %s177_s10 = sand.u32 1, %s883_s14  }
  0x24   : > { %p37_p3 = scmp.eq.s32.totalorder %s36_s9, 0  ;;  %s663_s11 = smul.u32 48, %s177_s10 }
  0x25   : > { %s603_s19 = smul.u32 768, %s891_s16  ;;  %p1022_p11 = pnand %p687_p0, %p48_p12 }
  0x26   : > { %s1019_s18 = scalar_select %p37_p3, %s883_s14, %s39_s7  }
  0x27   : > { %s181_s25 = scalar_lea.vmem [#allocation2], %s663_s11  ;;  %s187_s5 = scalar_lea.hbm %s1132_s0, %s603_s19 }
  0x28   : > { %s188_s26 = sshll.u32 %s181_s25, 4  ;;  %s178_s6 = scalar_lea.sflag [#allocation3], %s177_s10  ;;  %s189_s26 = int_to_ptr.vmem [resolvable:$true] %s188_s26 }
  0x29   : > { %p785_p2 = pneg %p1022_p11  ;;  %s796_s9 = scalar_lea.vmem %s189_s26, 768 }
  0x2a   : > { %p797_p5 = scmp.ne.s32.totalorder %s189_s26, %s796_s9  ;;  %s900_s7 = smov [#allocation2]  }
  0x2b   : > { %s801_s11 = sshll.u32 %s900_s7, 4  ;;  %s802_s11 = int_to_ptr.vmem [resolvable:$false] %s801_s11 }
  0x2c   : > { %p799_p7 = pnand %p797_p5, %p785_p2  ;;  %s803_s25 = scalar_lea.vmem %s802_s11, 1536 }
  0x2d   : > { %p804_p6 = scmp.lt.s32.totalorder %s189_s26, %s802_s11  ;;  %p805_p9 = scmp.lt.s32.totalorder %s803_s25, %s796_s9 }
  0x2e   : > { %p800_p4 = pneg %p799_p7 }
  0x2f   : > { %p806_p12 = por %p805_p9, %p804_p6 }
  0x31   : > { %p807_p0 = pnand %p806_p12, %p800_p4 }
  0x33   : > { %810 = shalt.err (!%p807_p0)
}
  0x34   : > { %681 = dma.hbm_to_vmem [thread:$0]  (!%p1022_p11), %s187_s5, 768, %s189_s26, %s178_s6, %s898_s30, %s898_s30, %s899_s4  }
  0x35   : > { %200 = sbr.rel (%p978_p8) target bundleno = 317 (0x13d), region = 32  ;;  %s1039_s10 = sand.u32 (!%p978_p8), 1, %s879_s13  }
  0x36   : > { %s664_s19 = smul.u32 (!%p978_p8), 48, %s1039_s10  ;;  %s203_s29 = scalar_lea.sflag (!%p978_p8), [#allocation3], %s1039_s10 }
  0x37   : > { %p1145_p3 = scmp.ne.s32.totalorder (!%p978_p8), %s1139_s22, 0 }
  0x38   : > { %s1043_s21 = scalar_lea.vmem (!%p978_p8), [#allocation2], %s664_s19 }
  0x3a   : > { %862 = dma.done.wait (%p1145_p3), %s203_s29, 768  }
  0x3b   : > { %864 = vsyncadd (%p1145_p3), %s203_s29, 4294966528 }
  0x3c   : > { %866 = dma.done.wait (%p958_p1), [#allocation6], 1024  }
  0x3d   : > { %868 = vsyncadd (%p958_p1), [#allocation6], 4294966272  ;;  %v743_v0 = vld [vmem:[#allocation5 + $0x38] sm:$0xff]   ;;  %v744_v1 = vld [vmem:[#allocation5 + $0x30] sm:$0xff]   ;;  %s665_s20 = smul.u32 96, %s1039_s10  ;;  %s901_s7 = smov [#allocation7]  }
  0x3e   : > { %647 = vmatprep.subr.bf16.mxu1 %v743_v0  ;;  %619 = vmatprep.subr.bf16.mxu0 %v743_v0  ;;  %v745_v2 = vld [vmem:[#allocation5 + $0x28] sm:$0xff]   ;;  %v746_v3 = vld [vmem:[#allocation5 + $0x20] sm:$0xff]   ;;  %v747_v6 = vld [vmem:[#allocation5 + $0x18] sm:$0xff]   ;;  %s604_s4 = smul.u32 1536, %s887_s15  ;;  %s455_s15 = scalar_lea.sflag [#allocation4], %s1039_s10 }
  0x3f   : > { %655 = vmatpush3.bf16.msra.mxu1 %v743_v0  ;;  %620 = vmatpush3.bf16.msra.mxu0 %v743_v0  ;;  %v751_v4 = vld [vmem:[%s1043_s21 + $0x10] sm:$0xff]   ;;  %v753_v5 = vld [vmem:[%s1043_s21] sm:$0xff]   ;;  %v749_v8 = vld [vmem:[#allocation5 + $0x8] sm:$0xff]   ;;  %s1063_s30 = scalar_lea.vmem [#allocation7], %s665_s20  ;;  %s815_s11 = sshll.u32 %s901_s7, 4  ;;  %s816_s11 = int_to_ptr.vmem [resolvable:$false] %s815_s11 }
  0x40   : > { %648 = vmatprep.subr.bf16.mxu1 %v744_v1  ;;  %621 = vmatprep.subr.bf16.mxu0 %v744_v1  ;;  %v748_v7 = vld [vmem:[#allocation5 + $0x10] sm:$0xff]   ;;  %v750_v9 = vld [vmem:[#allocation5] sm:$0xff]   ;;  %v752_v10 = vld [vmem:[%s1043_s21 + $0x18] sm:$0xff]   ;;  %s469_s26 = sshll.u32 %s1063_s30, 4  ;;  %s1080_s6 = scalar_lea.hbm %s1135_s3, %s604_s4  ;;  %s1082_s26 = int_to_ptr.vmem [resolvable:$true] %s469_s26 }
  0x41   : > { %639 = vmatprep.mubr.bf16.mxu1 %v751_v4  ;;  %635 = vmatprep.mubr.bf16.mxu0 %v753_v5  ;;  %v754_v11 = vld [vmem:[%s1043_s21 + $0x8] sm:$0xff]   ;;  %v755_v12 = vld [vmem:[%s1043_s21 + $0x20] sm:$0xff]   ;;  %s811_s9 = scalar_lea.vmem %s1082_s26, 1536  ;;  %s817_s25 = scalar_lea.vmem %s816_s11, 3072 }
  0x42   : > { %v756_v13 = vld [vmem:[%s1043_s21 + $0x28] sm:$0xff]   ;;  %v585_v14 = vld [vmem:[%s1134_s2] ss:$0 sm:$0xff]  ;;  %p812_p1 = scmp.ne.s32.totalorder %s1082_s26, %s811_s9  ;;  %p818_p2 = scmp.lt.s32.totalorder %s1082_s26, %s816_s11 }
  0x43   : > { %656 = vmatpush3.bf16.msra.mxu1 %v744_v1  ;;  %622 = vmatpush3.bf16.msra.mxu0 %v744_v1  ;;  %p819_p5 = scmp.lt.s32.totalorder %s817_s25, %s811_s9 }
  0x44   : > { %649 = vmatprep.subr.bf16.mxu1 %v745_v2  ;;  %623 = vmatprep.subr.bf16.mxu0 %v745_v2  ;;  %p813_p8 = pnand %p812_p1, %p1010_p13 }
  0x45   : > { %p820_p7 = por %p819_p5, %p818_p2 }
  0x46   : > { %p814_p11 = pneg %p813_p8 }
  0x47   : > { %657 = vmatpush3.bf16.msra.mxu1 %v745_v2  ;;  %624 = vmatpush3.bf16.msra.mxu0 %v745_v2 }
  0x48   : > { %650 = vmatprep.subr.bf16.mxu1 %v746_v3  ;;  %625 = vmatprep.subr.bf16.mxu0 %v746_v3  ;;  %p821_p4 = pnand %p820_p7, %p814_p11 }
  0x4b   : > { %658 = vmatpush3.bf16.msra.mxu1 %v746_v3  ;;  %626 = vmatpush3.bf16.msra.mxu0 %v746_v3 }
  0x4c   : > { %651 = vmatprep.subr.bf16.mxu1 %v747_v6  ;;  %627 = vmatprep.subr.bf16.mxu0 %v747_v6 }
  0x4f   : > { %659 = vmatpush3.bf16.msra.mxu1 %v747_v6  ;;  %628 = vmatpush3.bf16.msra.mxu0 %v747_v6 }
  0x50   : > { %652 = vmatprep.subr.bf16.mxu1 %v748_v7  ;;  %629 = vmatprep.subr.bf16.mxu0 %v748_v7 }
  0x53   : > { %660 = vmatpush3.bf16.msra.mxu1 %v748_v7  ;;  %630 = vmatpush3.bf16.msra.mxu0 %v748_v7 }
  0x54   : > { %653 = vmatprep.subr.bf16.mxu1 %v749_v8  ;;  %631 = vmatprep.subr.bf16.mxu0 %v749_v8 }
  0x57   : > { %661 = vmatpush3.bf16.msra.mxu1 %v749_v8  ;;  %632 = vmatpush3.bf16.msra.mxu0 %v749_v8 }
  0x58   : > { %654 = vmatprep.subr.bf16.mxu1 %v750_v9  ;;  %633 = vmatprep.subr.bf16.mxu0 %v750_v9 }
  0x5b   : > { %662 = vmatpush3.bf16.msra.mxu1 %v750_v9  ;;  %634 = vmatpush3.bf16.msra.mxu0 %v750_v9 }
  0x5e   : > { %640 = vmatmul.mubr.bf16.vlgmr.msra.gmra.mxu1 %v752_v10  ;;  %636 = vmatmul.mubr.bf16.vlgmr.msra.gmra.mxu0 %v754_v11 }
  0x5f   : > { %643 = vmatprep.mubr.bf16.mxu1 %v755_v12 }
  0x66   : > { %644 = vmatmul.mubr.bf16.gmra.mxu1 %v756_v13 }
 0x11e   : > { %v641_v15 = vpop.f32.mrf.mxu1  ;;  %v637_v16 = vpop.f32.mrf.mxu0 }
 0x11f   : > { %v420_v17 = vadd.f32 %v641_v15, %v585_v14  ;;  %v404_v18 = vadd.f32 %v637_v16, %v585_v14 }
 0x120   : > { %v411_v19 = vpop.f32.mrf.mxu1  ;;  %v395_v20 = vpop.f32.mrf.mxu0 }
 0x121   : > { %448 = vst [vmem:[%s1063_s30 + $0x30] sm:$0xff] %v420_v17  ;;  %444 = vst [vmem:[%s1063_s30 + $0x10] sm:$0xff] %v404_v18  ;;  %v412_v21 = vadd.f32 %v585_v14, %v411_v19  ;;  %v396_v22 = vadd.f32 %v585_v14, %v395_v20 }
 0x122   : > { %v642_v23 = vpop.f32.mrf.mxu1  ;;  %v638_v24 = vpop.f32.mrf.mxu0 }
 0x123   : > { %446 = vst [vmem:[%s1063_s30 + $0x20] sm:$0xff] %v412_v21  ;;  %442 = vst [vmem:[%s1063_s30] sm:$0xff] %v396_v22  ;;  %v423_v25 = vadd.f32 %v642_v23, %v585_v14  ;;  %v407_v26 = vadd.f32 %v638_v24, %v585_v14 }
 0x124   : > { %v414_v27 = vpop.f32.mrf.mxu1  ;;  %v398_v28 = vpop.f32.mrf.mxu0 }
 0x125   : > { %449 = vst [vmem:[%s1063_s30 + $0x38] sm:$0xff] %v423_v25  ;;  %445 = vst [vmem:[%s1063_s30 + $0x18] sm:$0xff] %v407_v26  ;;  %v415_v29 = vadd.f32 %v585_v14, %v414_v27  ;;  %v399_v30 = vadd.f32 %v585_v14, %v398_v28 }
 0x126   : > { %v645_v31 = vpop.f32.mrf.mxu1 }
 0x127   : > { %447 = vst [vmem:[%s1063_s30 + $0x28] sm:$0xff] %v415_v29  ;;  %443 = vst [vmem:[%s1063_s30 + $0x8] sm:$0xff] %v399_v30  ;;  %v436_v32 = vadd.f32 %v645_v31, %v585_v14 }
 0x128   : > { %v427_v33 = vpop.f32.mrf.mxu1 }
 0x129   : > { %452 = vst [vmem:[%s1063_s30 + $0x50] sm:$0xff] %v436_v32  ;;  %v428_v34 = vadd.f32 %v585_v14, %v427_v33 }
 0x12a   : > { %v646_v35 = vpop.f32.mrf.mxu1 }
 0x12b   : > { %450 = vst [vmem:[%s1063_s30 + $0x40] sm:$0xff] %v428_v34  ;;  %v439_v36 = vadd.f32 %v646_v35, %v585_v14 }
 0x12c   : > { %v430_v37 = vpop.f32.mrf.mxu1 }
 0x12d   : > { %453 = vst [vmem:[%s1063_s30 + $0x58] sm:$0xff] %v439_v36  ;;  %v431_v38 = vadd.f32 %v585_v14, %v430_v37 }
 0x12f   : > { %451 = vst [vmem:[%s1063_s30 + $0x48] sm:$0xff] %v431_v38 }
 0x130   : > { %824 = shalt.err (!%p821_p4)
}
 0x131   : > { %s825_s19 = scalar_lea.hbm %s1080_s6, 1536  ;;  %s829_s20 = scalar_lea.hbm %s1135_s3, 3072 }
 0x132   : > { %p826_p6 = scmp.ne.s32.totalorder %s1080_s6, %s825_s19  ;;  %p830_p0 = scmp.lt.s32.totalorder %s1080_s6, %s1135_s3 }
 0x133   : > { %p831_p3 = scmp.lt.s32.totalorder %s829_s20, %s825_s19 }
 0x134   : > { %p827_p9 = pnand %p826_p6, %p1010_p13 }
 0x135   : > { %p832_p1 = por %p831_p3, %p830_p0 }
 0x136   : > { %p828_p12 = pneg %p827_p9 }
 0x138   : > { %p833_p8 = pnand %p832_p1, %p828_p12 }
 0x13a   : > { %836 = shalt.err (!%p833_p8)
}
 0x13b   : > { %s902_s30 = smov 128   ;;  %s903_s4 = smov 8  }
 0x13c   : > { %672 = dma.vmem_to_hbm [thread:$0]  (%p1010_p13), %s1082_s26, 1536, %s1080_s6, %s455_s15, %s902_s30, %s902_s30, %s903_s4  }
 0x13d PF: > { %s484_s27 = sand.u32 1, %s875_s12   ;;  %p1146_p11 = scmp.ne.s32.totalorder %s1140_s23, 0 }
 0x13e   : > { %s485_s5 = scalar_lea.sflag [#allocation4], %s484_s27 }
 0x13f   : > { %p683_p2 = pnand %p581_p10, %p1146_p11 }
 0x141   : > { %p684_p5 = pneg %p683_p2 }
 0x143   : > { %870 = dma.done.wait (%p684_p5), %s485_s5, 1536  }
 0x144   : > { %872 = vsyncadd (%p684_p5), %s485_s5, 4294965760  ;;  %s20_s17 = sadd.s32 1, %s895_s17   ;;  %s1147_s12 = smov %s879_s13 }
 0x145   : > { %p17_p7 = scmp.ge.s32.totalorder %s20_s17, 4   ;;  %s1148_s13 = smov %s883_s14 }
 0x146   : > { %s1149_s14 = smov %s1019_s18  ;;  %s1150_s15 = smov %s891_s16 }
 0x147   : > { %s1151_s16 = smov %s1153_s28  ;;  %19 = sbr.rel (!%p17_p7) target bundleno = 7 (0x7), region = 85 }
 0x14c   :  { %490 = vsyncpa [#allocation3], 1 }
 0x14d   :  { %492 = vsyncpa [#allocation3 + $0x1], 1 }
 0x14e   :  { %493 = vsyncpa [#allocation6], 1 }
 0x14f   :  { %494 = vsyncpa [#allocation4], 1 }
 0x150   :  { %496 = vsyncpa [#allocation4 + $0x1], 1 }

</bundles_post_ra>
